<compile_context>
chip_gen: v6e
topology: v6e:2x2x1
jax: 0.10.0
libtpu: 0.0.40
codegen_flags: <defaults>
</compile_context>

<pallas_src>
from functools import partial

import jax
import jax.numpy as jnp
from jax.experimental import pallas as pl
from jax.experimental.pallas import tpu as pltpu


def _round_up(x, m):
    return ((x + m - 1) // m) * m


def _pick_tm(m_rows, tm_max, mult, min_tile=256):
    """Largest divisor of m_rows that is a multiple of `mult` and <= tm_max.

    Prefers divisors giving an even grid length (keeps both v7x TensorCores
    busy).  Returns 0 if no acceptable divisor exists (caller pads instead).
    """
    limit = min(tm_max, m_rows)
    divs = [d for d in range(mult, limit + 1, mult) if m_rows % d == 0]
    divs = [d for d in divs if d >= min(min_tile, m_rows)]
    if not divs:
        return 0
    even = [d for d in divs if (m_rows // d) % 2 == 0]
    return max(even) if even else max(divs)


def _patch_embed_kernel(x_ref, w_ref, b_ref, o_ref):
    # x_ref: (TM, K) bf16 patch tile, w_ref: (K, Dp) bf16 resident weight,
    # b_ref: (1, Dp) f32 resident bias.  f32 accumulate on the MXU.
    acc = jnp.dot(x_ref[...], w_ref[...], preferred_element_type=jnp.float32)
    o_ref[...] = (acc + b_ref[...]).astype(o_ref.dtype)


@partial(jax.jit, static_argnames=("patch_size", "embed_dim", "tm"))
def patch_embed_pallas(x_nchw, w_mat, b_mat, *, patch_size, embed_dim, tm=1024):
    """Forward pass of PatchEmbed.

    x_nchw: (B, C, H, W)          input image batch (any float dtype)
    w_mat:  (K, Dp) bf16          pre-transposed / padded projection weight
    b_mat:  (1, Dp) f32           pre-padded bias
    returns (B, N, embed_dim) in x_nchw.dtype, N = (H//p)*(W//p)
    """
    B, C, H, W = x_nchw.shape
    p = patch_size
    Hp, Wp = H // p, W // p
    N = Hp * Wp
    K = C * p * p
    M = B * N
    d_pad = w_mat.shape[1]
    compute_dtype = w_mat.dtype
    out_dtype = x_nchw.dtype

    # Cast BEFORE the relayout so the XLA transpose moves half the bytes.
    xc = x_nchw.astype(compute_dtype)
    # (B,C,Hp,p,Wp,p) -> (B,Hp,Wp,C,p,p) -> (M,K); features ordered (c,ph,pw)
    # to match the conv-weight reshape.
    patches = xc.reshape(B, C, Hp, p, Wp, p)
    patches = patches.transpose(0, 2, 4, 1, 3, 5).reshape(M, K)
    # TODO(synk): fold this relayout into the kernel (grid over (B, Hp) with a
    # (1, C, p, W) in_spec) to avoid the extra HBM pass of the XLA transpose.

    # --- pick the row tile; avoid M padding whenever possible ---------------
    mult = 16 if compute_dtype == jnp.bfloat16 else 8   # sublane packing
    if M <= tm:
        tm_eff, m_rows, padded = M, M, False             # single full block
    else:
        tm_eff = _pick_tm(M, tm, mult)
        if tm_eff:
            m_rows, padded = M, False
        else:
            tm_eff = max(mult, (min(tm, M) // mult) * mult)
            m_rows = _round_up(M, tm_eff)
            padded = True
            patches = jnp.pad(patches, ((0, m_rows - M), (0, 0)))

    grid = (m_rows // tm_eff,)

    # --- VMEM budget: double-buffered streams + single-buffered residents ---
    vmem_need = (2 * tm_eff * K * jnp.dtype(compute_dtype).itemsize
                 + 2 * tm_eff * d_pad * jnp.dtype(out_dtype).itemsize
                 + K * d_pad * jnp.dtype(w_mat.dtype).itemsize
                 + d_pad * jnp.dtype(b_mat.dtype).itemsize)
    vmem_limit = min(100 << 20, max(16 << 20, int(1.25 * vmem_need) + (2 << 20)))

    out = pl.pallas_call(
        _patch_embed_kernel,
        out_shape=jax.ShapeDtypeStruct((m_rows, d_pad), out_dtype),
        grid_spec=pl.GridSpec(
            grid=grid,
            in_specs=[
                # streamed patch tiles (double-buffered by default)
                pl.BlockSpec((tm_eff, K), lambda i: (i, 0)),
                # VMEM-resident weight/bias: constant block index, single buffer
                pl.BlockSpec((K, d_pad), lambda i: (0, 0),
                             pipeline_mode=pl.Buffered(1)),
                pl.BlockSpec((1, d_pad), lambda i: (0, 0),
                             pipeline_mode=pl.Buffered(1)),
            ],
            out_specs=pl.BlockSpec((tm_eff, d_pad), lambda i: (i, 0)),
        ),
        compiler_params=pltpu.CompilerParams(
            dimension_semantics=("parallel",),
            vmem_limit_bytes=vmem_limit),
    )(patches, w_mat, b_mat)

    if padded:
        out = out[:M]
    if d_pad != embed_dim:
        out = out[:, :embed_dim]     # free when embed_dim is a multiple of 128
    return out.reshape(B, N, embed_dim)


class PatchEmbedPallas:
    """Mirror of the PyTorch PatchEmbed module (deterministic synthetic init).

    The projection weight is reshaped/transposed, D-padded to a lane-dense
    multiple of 128 and cast to bf16 ONCE here, so the jitted forward does no
    per-call weight preprocessing.
    """

    def __init__(self, img_size=(16, 16), patch_size=4, in_chans=4, embed_dim=32,
                 key=None, compute_dtype=jnp.bfloat16):
        self.img_size = img_size
        self.patch_size = patch_size
        self.embed_dim = embed_dim
        self.num_patches = (img_size[0] // patch_size) * (img_size[1] // patch_size)

        if key is None:
            key = jax.random.PRNGKey(0)
        kw, kb = jax.random.split(key)
        fan_in = in_chans * patch_size * patch_size
        bound = 1.0 / (fan_in ** 0.5)
        # nn.Conv2d default init: uniform(-bound, bound) for weight and bias.
        self.weight = jax.random.uniform(
            kw, (embed_dim, in_chans, patch_size, patch_size),
            minval=-bound, maxval=bound, dtype=jnp.float32)
        self.bias = jax.random.uniform(
            kb, (embed_dim,), minval=-bound, maxval=bound, dtype=jnp.float32)

        # Pre-pack the projection for the kernel.
        K = in_chans * patch_size * patch_size
        d_pad = max(128, _round_up(embed_dim, 128))
        w_mat = self.weight.reshape(embed_dim, K).T          # (K, D)
        b_vec = self.bias
        if d_pad != embed_dim:
            w_mat = jnp.pad(w_mat, ((0, 0), (0, d_pad - embed_dim)))
            b_vec = jnp.pad(b_vec, (0, d_pad - embed_dim))
        self.w_mat = w_mat.astype(compute_dtype)             # (K, Dp) bf16
        self.b_mat = b_vec.reshape(1, d_pad).astype(jnp.float32)

    def __call__(self, x_nchw, tm=1024):
        return patch_embed_pallas(x_nchw, self.w_mat, self.b_mat,
                                  patch_size=self.patch_size,
                                  embed_dim=self.embed_dim, tm=tm)


if __name__ == "__main__":
    key = jax.random.PRNGKey(0)
    k_in, k_mod = jax.random.split(key)

    B, C, H, W = 2, 4, 16, 16
    patch_size, embed_dim = 4, 32

    x = jax.random.normal(k_in, (B, C, H, W), dtype=jnp.float32)

    module = PatchEmbedPallas(img_size=(H, W), patch_size=patch_size,
                              in_chans=C, embed_dim=embed_dim, key=k_mod)
    out = module(x)
    out = jax.block_until_ready(out)

    # Reference: lax.conv (same semantics as nn.Conv2d stride=p).  Inputs are
    # routed through bf16 exactly like the kernel does, so the only remaining
    # difference is f32 accumulation order.
    x_q = x.astype(jnp.bfloat16).astype(jnp.float32)
    w_q = module.weight.astype(jnp.bfloat16).astype(jnp.float32)
    ref = jax.lax.conv_general_dilated(
        x_q, w_q, window_strides=(patch_size, patch_size),
        padding="VALID", dimension_numbers=("NCHW", "OIHW", "NCHW"))
    ref = ref + module.bias.reshape(1, embed_dim, 1, 1)
    ref = ref.reshape(B, embed_dim, -1).transpose(0, 2, 1)

    assert out.shape == (B, module.num_patches, embed_dim), out.shape
    assert out.dtype == x.dtype, out.dtype
    assert jnp.allclose(out, ref, atol=1e-3, rtol=1e-3)

    print("KERNEL_OK")
</pallas_src>

<mosaic_0001>
module attributes {stable_mosaic.version = 11 : i64} {
  func.func @_patch_embed_kernel(%arg0: i32, %arg1: memref<32x64xbf16, #tpu.memory_space<vmem>>, %arg2: memref<64x128xbf16, #tpu.memory_space<vmem>>, %arg3: memref<1x128xf32, #tpu.memory_space<vmem>>, %arg4: memref<32x128xf32, #tpu.memory_space<vmem>>) attributes {dimension_semantics = [#tpu.dimension_semantics<parallel>], iteration_bounds = array<i64: 1>, scalar_prefetch = 0 : i64, scratch_operands = 0 : i64, tpu.core_type = #tpu.core_type<tc>, window_params = [{transform_indices = @transform_0, window_bounds = array<i64: 32, 64>}, {pipeline_mode = #tpu.pipeline_mode<synchronous>, transform_indices = @transform_1, window_bounds = array<i64: 64, 128>}, {pipeline_mode = #tpu.pipeline_mode<synchronous>, transform_indices = @transform_2, window_bounds = array<i64: 1, 128>}, {transform_indices = @transform_3, window_bounds = array<i64: 32, 128>}]} {
    %c0 = arith.constant 0 : index
    %c0_0 = arith.constant 0 : index
    %0 = vector.load %arg1[%c0, %c0_0] : memref<32x64xbf16, #tpu.memory_space<vmem>>, vector<32x64xbf16>
    %c0_1 = arith.constant 0 : index
    %c0_2 = arith.constant 0 : index
    %1 = vector.load %arg2[%c0_1, %c0_2] : memref<64x128xbf16, #tpu.memory_space<vmem>>, vector<64x128xbf16>
    %cst = arith.constant dense<0.000000e+00> : vector<32x128xf32>
    %2 = tpu.matmul %0, %1, %cst {dimension_numbers = #tpu.dot_dimension_numbers<[1], [0], [0], [1], [0, 0, 1, 1], [], []>} : vector<32x64xbf16>, vector<64x128xbf16>, vector<32x128xf32> -> vector<32x128xf32>
    %c0_3 = arith.constant 0 : index
    %c0_4 = arith.constant 0 : index
    %3 = vector.load %arg3[%c0_3, %c0_4] : memref<1x128xf32, #tpu.memory_space<vmem>>, vector<1x128xf32>
    %4 = vector.broadcast %3 : vector<1x128xf32> to vector<32x128xf32>
    %5 = arith.addf %2, %4 : vector<32x128xf32>
    %c0_5 = arith.constant 0 : index
    %c0_6 = arith.constant 0 : index
    %6 = vector.load %arg4[%c0_5, %c0_6] : memref<32x128xf32, #tpu.memory_space<vmem>>, vector<32x128xf32>
    tpu.vector_store %arg4[%c0_5, %c0_6], %5 {strides = array<i32>} : memref<32x128xf32, #tpu.memory_space<vmem>>, vector<32x128xf32>,
    return
  }
  func.func @transform_0(%arg0: i32) -> (i32, i32) {
    %c0_i32 = arith.constant 0 : i32
    %c0_i32_0 = arith.constant 0 : i32
    return %arg0, %c0_i32 : i32, i32
  }
  func.func @transform_1(%arg0: i32) -> (i32, i32) {
    %c0_i32 = arith.constant 0 : i32
    %c0_i32_0 = arith.constant 0 : i32
    %c0_i32_1 = arith.constant 0 : i32
    return %c0_i32, %c0_i32_0 : i32, i32
  }
  func.func @transform_2(%arg0: i32) -> (i32, i32) {
    %c0_i32 = arith.constant 0 : i32
    %c0_i32_0 = arith.constant 0 : i32
    %c0_i32_1 = arith.constant 0 : i32
    return %c0_i32, %c0_i32_0 : i32, i32
  }
  func.func @transform_3(%arg0: i32) -> (i32, i32) {
    %c0_i32 = arith.constant 0 : i32
    %c0_i32_0 = arith.constant 0 : i32
    return %arg0, %c0_i32 : i32, i32
  }
}

</mosaic_0001>

<bundles_post_ra>
// kernel: patch_embed_pallas.1
= control target key start
LH: loop header
LB: loop body
LE: loop exit
PB: predicated region body
PF: predicated region fallthrough
CT: control target
= control target key end

     0   :  { %vm69_vm0 = vcmask 523264   ;;  %s250_s0 = inlined_call_operand.vmem [shape: bf16[32,64], index: 0, kind: input, shape index: {}]   ;;  %s251_s1 = inlined_call_operand.vmem [shape: bf16[64,128], index: 1, kind: input, shape index: {}]   ;;  %s252_s2 = inlined_call_operand.vmem [shape: f32[1,128], index: 2, kind: input, shape index: {}]   ;;  %s253_s3 = inlined_call_operand.hbm [shape: f32[32,128], index: 3, kind: output, shape index: {}]  }
   0x1   :  { %v175_v0 = vld [vmem:[%s251_s1 + $0x18] sm:$0xff]   ;;  %v176_v1 = vld [vmem:[%s251_s1 + $0x10] sm:$0xff]   ;;  %v177_v2 = vld [vmem:[%s251_s1 + $0x8] sm:$0xff]  }
   0x2   :  { %160 = vmatprep.subr.bf16.mxu0 %v175_v0  ;;  %v179_v3 = vld [vmem:[%s250_s0] sm:$0xff]  }
   0x3   :  { %161 = vmatpush3.bf16.msra.mxu0 %v175_v0  ;;  %168 = vmatprep.mubr.msk.bf16.mxu0 %vm69_vm0, %v179_v3 }
   0x4   :  { %162 = vmatprep.subr.bf16.mxu0 %v176_v1 }
   0x5   :  { %8 = vsyncpa [#allocation3], 0  ;;  %v178_v4 = vld [vmem:[%s251_s1] sm:$0xff]   ;;  %v180_v5 = vld [vmem:[%s250_s0 + $0x8] sm:$0xff]   ;;  %s203_s26 = smov [#allocation2]  }
   0x6   :  { %v145_v6 = vld [vmem:[%s252_s2] ss:$0 sm:$0xff]  ;;  %s134_s27 = sshll.u32 %s203_s26, 4  ;;  %s135_s27 = int_to_ptr.vmem [resolvable:$true] %s134_s27 }
   0x7   :  { %163 = vmatpush3.bf16.msra.mxu0 %v176_v1  ;;  %s181_s0 = scalar_lea.vmem %s135_s27, 512  ;;  %p186_p1 = scmp.lt.s32.totalorder %s135_s27, %s135_s27 }
   0x8   :  { %164 = vmatprep.subr.bf16.mxu0 %v177_v2  ;;  %p182_p0 = scmp.ne.s32.totalorder %s135_s27, %s181_s0  ;;  %p187_p2 = scmp.lt.s32.totalorder %s181_s0, %s181_s0 }
   0xa   :  { %p188_p3 = por %p187_p2, %p186_p1 }
   0xb   :  { %165 = vmatpush3.bf16.msra.mxu0 %v177_v2 }
   0xc   :  { %166 = vmatprep.subr.bf16.mxu0 %v178_v4  ;;  %p189_p4 = pnand %p188_p3, %p182_p0 }
   0xf   :  { %167 = vmatpush3.bf16.msra.mxu0 %v178_v4 }
  0x12   :  { %169 = vmatmul.mubr.msk.bf16.vlgmr.msra.gmra.mxu0 %vm69_vm0, %v180_v5 }
  0xd2   :  { %v170_v7 = vpop.f32.mrf.mxu0 }
  0xd3   :  { %v119_v8 = vadd.f32 %v170_v7, %v145_v6 }
  0xd4   :  { %v110_v9 = vpop.f32.mrf.mxu0 }
  0xd5   :  { %127 = vst [vmem:[#allocation2 + $0x10] sm:$0xff] %v119_v8  ;;  %v111_v10 = vadd.f32 %v145_v6, %v110_v9 }
  0xd6   :  { %v171_v11 = vpop.f32.mrf.mxu0 }
  0xd7   :  { %125 = vst [vmem:[#allocation2] sm:$0xff] %v111_v10  ;;  %v122_v12 = vadd.f32 %v171_v11, %v145_v6 }
  0xd8   :  { %v113_v13 = vpop.f32.mrf.mxu0 }
  0xd9   :  { %128 = vst [vmem:[#allocation2 + $0x18] sm:$0xff] %v122_v12  ;;  %v114_v14 = vadd.f32 %v145_v6, %v113_v13 }
  0xdb   :  { %126 = vst [vmem:[#allocation2 + $0x8] sm:$0xff] %v114_v14 }
  0xdc   :  { %192 = shalt.err (!%p189_p4)
}
  0xdd   :  { %s204_s1 = smov 128   ;;  %s205_s2 = smov 8  }
  0xde   :  { %140 = dma.vmem_to_hbm [thread:$0]  %s135_s27, 512, %s253_s3, [#allocation3], %s204_s1, %s204_s1, %s205_s2  }
  0xdf   :  { %201 = dma.done.wait [#allocation3], 512  }
  0xe0   :  { %202 = vsyncadd [#allocation3], 4294966784 }
  0xe1   :  { %144 = vsyncpa [#allocation3], 1 }

</bundles_post_ra>
